<compile_context>
chip_gen: v7x
topology: tpu7x:2x2x1
jax: 0.10.0
libtpu: 0.0.40
codegen_flags: <defaults>
</compile_context>

<pallas_src>
import functools

import jax
import jax.numpy as jnp
from jax.experimental import pallas as pl
from jax.experimental.pallas import tpu as pltpu


# ----------------------------- Pallas kernel ------------------------------ #
def _fused_encoder_kernel(*refs, n_layers):
    """refs = (x, w_0..w_{L-1}, b_0..b_{L-1}, out).

    Computes out = W_L(...leaky(W_1(x) + b_1)...) + b_L fully in VMEM.
    All matmuls accumulate in f32 on the MXU; LeakyReLU(0.2) on the VPU.
    """
    x_ref = refs[0]
    w_refs = refs[1:1 + n_layers]
    b_refs = refs[1 + n_layers:1 + 2 * n_layers]
    o_ref = refs[1 + 2 * n_layers]

    h = x_ref[...]
    for li in range(n_layers):
        h = jnp.dot(h, w_refs[li][...], preferred_element_type=jnp.float32)
        h = h + b_refs[li][...]
        if li < n_layers - 1:                      # all but the last layer
            h = jnp.where(h > 0.0, h, 0.2 * h)     # LeakyReLU(0.2)
    o_ref[...] = h.astype(o_ref.dtype)


def _round_up(x, m):
    return (x + m - 1) // m * m


def _choose_tm(m_padded):
    for tm in (512, 256, 128):
        if m_padded % tm == 0:
            return tm
    return m_padded  # small batch: single full block


def encoder_forward(params, x):
    """x: (B, 1, H, W) NCHW float32 -> (B, z_dim*2). Single fused pallas_call."""
    dense = params["dense"]                       # list of (W:(in,out), b:(out,))
    B = x.shape[0]
    x_flat = x.reshape(B, -1)                      # NCHW flatten (== nn.Flatten)
    ws = [w for (w, _) in dense]
    bs = [b.reshape(1, -1) for (_, b) in dense]
    n_layers = len(ws)
    D0 = x_flat.shape[1]
    N_out = ws[-1].shape[1]

    # Pad batch to a sublane multiple and tile it ("parallel" -> megacore).
    Bp = _round_up(B, 8)
    if Bp != B:
        x_flat = jnp.pad(x_flat, ((0, Bp - B), (0, 0)))
    TM = _choose_tm(Bp)
    grid = (Bp // TM,)

    # --- VMEM budget guard (conservative: v5e 16 MiB scoped default) -------
    weight_bytes = sum(w.size * 4 for w in ws) + sum(b.size * 4 for b in bs)
    io_bytes = (TM * D0 + TM * N_out) * 4
    inter_bytes = TM * max([D0] + [w.shape[1] for w in ws]) * 4
    vmem_est = 2 * (weight_bytes + io_bytes) + 4 * inter_bytes  # x2 double-buffer
    assert vmem_est < 12 * 2**20, (
        f"fused encoder needs ~{vmem_est/2**20:.1f} MiB VMEM; "
        "shapes too large for the single-block fused path")
    # TODO(synk): for large configs (big images / wide FCs) fall back to a
    # tiled grid with a K-reduction axis ("arbitrary") + VMEM f32 accumulator.

    in_specs = [pl.BlockSpec((TM, D0), lambda i: (i, 0))]
    for w in ws:
        in_specs.append(pl.BlockSpec(w.shape, lambda i: (0, 0)))
    for b in bs:
        in_specs.append(pl.BlockSpec(b.shape, lambda i: (0, 0)))
    out_specs = pl.BlockSpec((TM, N_out), lambda i: (i, 0))

    out = pl.pallas_call(
        functools.partial(_fused_encoder_kernel, n_layers=n_layers),
        out_shape=jax.ShapeDtypeStruct((Bp, N_out), jnp.float32),
        grid=grid,
        in_specs=in_specs,
        out_specs=out_specs,
        compiler_params=pltpu.CompilerParams(
            dimension_semantics=("parallel",)),
    )(x_flat, *ws, *bs)
    return out[:B]


# ------------------- init-time lowering (plain JAX, one-off) --------------- #
def conv_to_dense(w, b, in_chw, stride, padding):
    """Lower Conv2d (OIHW weights, NCHW acts) on a FIXED input size to a dense
    matrix T:(C*H*W, OC*OH*OW) and bias:(OC*OH*OW,), NCHW flatten order on both
    sides, so `x_flat @ T + bias == flatten(conv(x))` exactly."""
    C, H, W = in_chw
    OC, IC, KH, KW = w.shape
    assert IC == C
    eye = jnp.eye(C * H * W, dtype=w.dtype).reshape(C * H * W, C, H, W)
    y = jax.lax.conv_general_dilated(
        eye, w, window_strides=(stride, stride),
        padding=[(padding, padding), (padding, padding)],
        dimension_numbers=("NCHW", "OIHW", "NCHW"))
    _, _, OH, OW = y.shape
    T = y.reshape(C * H * W, OC * OH * OW)
    bias_full = jnp.broadcast_to(b[:, None, None], (OC, OH, OW)).reshape(-1)
    return T, bias_full, (OC, OH, OW)


def init_encoder_params(key, input_size, conv_layers, fc_layers, z_dim):
    """Raw params match the PyTorch module's layer structure; 'dense' is the
    init-time lowering used by the fused Pallas kernel."""
    raw_conv, raw_fc, dense = [], [], []
    in_chw = (1, input_size, input_size)
    k = key
    if conv_layers is not None:
        for n_channels, kernel_size, stride, padding in conv_layers:
            k, k1, k2 = jax.random.split(k, 3)
            w = 0.1 * jax.random.normal(
                k1, (n_channels, in_chw[0], kernel_size, kernel_size), jnp.float32)
            b = 0.1 * jax.random.normal(k2, (n_channels,), jnp.float32)
            raw_conv.append((w, b, stride, padding))
            T, bfull, in_chw = conv_to_dense(w, b, (in_chw[0], in_chw[1], in_chw[2]),
                                             stride, padding)
            dense.append((T, bfull))
    prev = in_chw[0] * in_chw[1] * in_chw[2]
    for fc_size in list(fc_layers) + [z_dim * 2]:
        k, k1, k2 = jax.random.split(k, 3)
        w = 0.1 * jax.random.normal(k1, (fc_size, prev), jnp.float32)  # (out, in)
        b = 0.1 * jax.random.normal(k2, (fc_size,), jnp.float32)
        raw_fc.append((w, b))
        dense.append((w.T, b))
        prev = fc_size
    return {"raw_conv": raw_conv, "raw_fc": raw_fc, "dense": dense}


def reference_forward(params, x):
    """Plain-JAX forward with the original module's semantics (for checking)."""
    h = x
    for (w, b, stride, padding) in params["raw_conv"]:
        h = jax.lax.conv_general_dilated(
            h, w, (stride, stride), [(padding, padding)] * 2,
            dimension_numbers=("NCHW", "OIHW", "NCHW"))
        h = h + b[None, :, None, None]
        h = jnp.where(h > 0.0, h, 0.2 * h)
    h = h.reshape(h.shape[0], -1)
    for (w, b) in params["raw_fc"][:-1]:
        h = h @ w.T + b
        h = jnp.where(h > 0.0, h, 0.2 * h)
    w, b = params["raw_fc"][-1]
    return h @ w.T + b


if __name__ == "__main__":
    # Config consistent with the module: 1x16x16 input, two convs, one hidden FC.
    input_size = 16
    conv_layers = [(4, 3, 2, 1), (8, 3, 2, 1)]   # (channels, kernel, stride, pad)
    fc_layers = [32]
    z_dim = 8

    key = jax.random.PRNGKey(0)
    k_param, k_x = jax.random.split(key)
    params = init_encoder_params(k_param, input_size, conv_layers, fc_layers, z_dim)

    x = jax.random.normal(k_x, (2, 1, input_size, input_size), jnp.float32)

    out = encoder_forward(params, x)
    jax.block_until_ready(out)
    assert out.shape == (2, z_dim * 2), out.shape

    ref = reference_forward(params, x)
    assert jnp.allclose(out, ref, atol=1e-3, rtol=1e-3), float(
        jnp.max(jnp.abs(out - ref)))
    print("KERNEL_OK")
</pallas_src>

<mosaic_0001>
module attributes {stable_mosaic.version = 11 : i64} {
  func.func @_fused_encoder_kernel(%arg0: i32, %arg1: memref<8x256xf32, #tpu.memory_space<vmem>>, %arg2: memref<256x256xf32, #tpu.memory_space<vmem>>, %arg3: memref<256x128xf32, #tpu.memory_space<vmem>>, %arg4: memref<128x32xf32, #tpu.memory_space<vmem>>, %arg5: memref<32x16xf32, #tpu.memory_space<vmem>>, %arg6: memref<1x256xf32, #tpu.memory_space<vmem>>, %arg7: memref<1x128xf32, #tpu.memory_space<vmem>>, %arg8: memref<1x32xf32, #tpu.memory_space<vmem>>, %arg9: memref<1x16xf32, #tpu.memory_space<vmem>>, %arg10: memref<8x16xf32, #tpu.memory_space<vmem>>) attributes {dimension_semantics = [#tpu.dimension_semantics<parallel>], iteration_bounds = array<i64: 1>, scalar_prefetch = 0 : i64, scratch_operands = 0 : i64, tpu.core_type = #tpu.core_type<tc>, window_params = [{transform_indices = @transform_0, window_bounds = array<i64: 8, 256>}, {pipeline_mode = #tpu.pipeline_mode<synchronous>, transform_indices = @transform_1, window_bounds = array<i64: 256, 256>}, {pipeline_mode = #tpu.pipeline_mode<synchronous>, transform_indices = @transform_2, window_bounds = array<i64: 256, 128>}, {pipeline_mode = #tpu.pipeline_mode<synchronous>, transform_indices = @transform_3, window_bounds = array<i64: 128, 32>}, {pipeline_mode = #tpu.pipeline_mode<synchronous>, transform_indices = @transform_4, window_bounds = array<i64: 32, 16>}, {pipeline_mode = #tpu.pipeline_mode<synchronous>, transform_indices = @transform_5, window_bounds = array<i64: 1, 256>}, {pipeline_mode = #tpu.pipeline_mode<synchronous>, transform_indices = @transform_6, window_bounds = array<i64: 1, 128>}, {pipeline_mode = #tpu.pipeline_mode<synchronous>, transform_indices = @transform_7, window_bounds = array<i64: 1, 32>}, {pipeline_mode = #tpu.pipeline_mode<synchronous>, transform_indices = @transform_8, window_bounds = array<i64: 1, 16>}, {transform_indices = @transform_9, window_bounds = array<i64: 8, 16>}]} {
    %c0 = arith.constant 0 : index
    %c0_0 = arith.constant 0 : index
    %0 = vector.load %arg1[%c0, %c0_0] : memref<8x256xf32, #tpu.memory_space<vmem>>, vector<8x256xf32>
    %c0_1 = arith.constant 0 : index
    %c0_2 = arith.constant 0 : index
    %1 = vector.load %arg2[%c0_1, %c0_2] : memref<256x256xf32, #tpu.memory_space<vmem>>, vector<256x256xf32>
    %cst = arith.constant dense<0.000000e+00> : vector<8x256xf32>
    %2 = tpu.matmul %0, %1, %cst {dimension_numbers = #tpu.dot_dimension_numbers<[1], [0], [0], [1], [0, 0, 1, 1], [], []>} : vector<8x256xf32>, vector<256x256xf32>, vector<8x256xf32> -> vector<8x256xf32>
    %c0_3 = arith.constant 0 : index
    %c0_4 = arith.constant 0 : index
    %3 = vector.load %arg6[%c0_3, %c0_4] : memref<1x256xf32, #tpu.memory_space<vmem>>, vector<1x256xf32>
    %4 = vector.broadcast %3 : vector<1x256xf32> to vector<8x256xf32>
    %5 = arith.addf %2, %4 : vector<8x256xf32>
    %cst_5 = arith.constant 0.000000e+00 : f32
    %6 = vector.broadcast %cst_5 : f32 to vector<8x256xf32>
    %7 = arith.cmpf ogt, %5, %6 : vector<8x256xf32>
    %cst_6 = arith.constant 2.000000e-01 : f32
    %8 = vector.broadcast %cst_6 : f32 to vector<8x256xf32>
    %9 = arith.mulf %8, %5 : vector<8x256xf32>
    %10 = arith.select %7, %5, %9 : vector<8x256xi1>, vector<8x256xf32>
    %c0_7 = arith.constant 0 : index
    %c0_8 = arith.constant 0 : index
    %11 = vector.load %arg3[%c0_7, %c0_8] : memref<256x128xf32, #tpu.memory_space<vmem>>, vector<256x128xf32>
    %cst_9 = arith.constant dense<0.000000e+00> : vector<8x128xf32>
    %12 = tpu.matmul %10, %11, %cst_9 {dimension_numbers = #tpu.dot_dimension_numbers<[1], [0], [0], [1], [0, 0, 1, 1], [], []>} : vector<8x256xf32>, vector<256x128xf32>, vector<8x128xf32> -> vector<8x128xf32>
    %c0_10 = arith.constant 0 : index
    %c0_11 = arith.constant 0 : index
    %13 = vector.load %arg7[%c0_10, %c0_11] : memref<1x128xf32, #tpu.memory_space<vmem>>, vector<1x128xf32>
    %14 = vector.broadcast %13 : vector<1x128xf32> to vector<8x128xf32>
    %15 = arith.addf %12, %14 : vector<8x128xf32>
    %cst_12 = arith.constant 0.000000e+00 : f32
    %16 = vector.broadcast %cst_12 : f32 to vector<8x128xf32>
    %17 = arith.cmpf ogt, %15, %16 : vector<8x128xf32>
    %cst_13 = arith.constant 2.000000e-01 : f32
    %18 = vector.broadcast %cst_13 : f32 to vector<8x128xf32>
    %19 = arith.mulf %18, %15 : vector<8x128xf32>
    %20 = arith.select %17, %15, %19 : vector<8x128xi1>, vector<8x128xf32>
    %c0_14 = arith.constant 0 : index
    %c0_15 = arith.constant 0 : index
    %21 = vector.load %arg4[%c0_14, %c0_15] : memref<128x32xf32, #tpu.memory_space<vmem>>, vector<128x32xf32>
    %cst_16 = arith.constant dense<0.000000e+00> : vector<8x32xf32>
    %22 = tpu.matmul %20, %21, %cst_16 {dimension_numbers = #tpu.dot_dimension_numbers<[1], [0], [0], [1], [0, 0, 1, 1], [], []>} : vector<8x128xf32>, vector<128x32xf32>, vector<8x32xf32> -> vector<8x32xf32>
    %c0_17 = arith.constant 0 : index
    %c0_18 = arith.constant 0 : index
    %23 = vector.load %arg8[%c0_17, %c0_18] : memref<1x32xf32, #tpu.memory_space<vmem>>, vector<1x32xf32>
    %24 = vector.broadcast %23 : vector<1x32xf32> to vector<8x32xf32>
    %25 = arith.addf %22, %24 : vector<8x32xf32>
    %cst_19 = arith.constant 0.000000e+00 : f32
    %26 = vector.broadcast %cst_19 : f32 to vector<8x32xf32>
    %27 = arith.cmpf ogt, %25, %26 : vector<8x32xf32>
    %cst_20 = arith.constant 2.000000e-01 : f32
    %28 = vector.broadcast %cst_20 : f32 to vector<8x32xf32>
    %29 = arith.mulf %28, %25 : vector<8x32xf32>
    %30 = arith.select %27, %25, %29 : vector<8x32xi1>, vector<8x32xf32>
    %c0_21 = arith.constant 0 : index
    %c0_22 = arith.constant 0 : index
    %31 = vector.load %arg5[%c0_21, %c0_22] : memref<32x16xf32, #tpu.memory_space<vmem>>, vector<32x16xf32>
    %cst_23 = arith.constant dense<0.000000e+00> : vector<8x16xf32>
    %32 = tpu.matmul %30, %31, %cst_23 {dimension_numbers = #tpu.dot_dimension_numbers<[1], [0], [0], [1], [0, 0, 1, 1], [], []>} : vector<8x32xf32>, vector<32x16xf32>, vector<8x16xf32> -> vector<8x16xf32>
    %c0_24 = arith.constant 0 : index
    %c0_25 = arith.constant 0 : index
    %33 = vector.load %arg9[%c0_24, %c0_25] : memref<1x16xf32, #tpu.memory_space<vmem>>, vector<1x16xf32>
    %34 = vector.broadcast %33 : vector<1x16xf32> to vector<8x16xf32>
    %35 = arith.addf %32, %34 : vector<8x16xf32>
    %c0_26 = arith.constant 0 : index
    %c0_27 = arith.constant 0 : index
    %36 = vector.load %arg10[%c0_26, %c0_27] : memref<8x16xf32, #tpu.memory_space<vmem>>, vector<8x16xf32>
    tpu.vector_store %arg10[%c0_26, %c0_27], %35 {strides = array<i32>} : memref<8x16xf32, #tpu.memory_space<vmem>>, vector<8x16xf32>,
    return
  }
  func.func @transform_0(%arg0: i32) -> (i32, i32) {
    %c0_i32 = arith.constant 0 : i32
    %c0_i32_0 = arith.constant 0 : i32
    return %arg0, %c0_i32 : i32, i32
  }
  func.func @transform_1(%arg0: i32) -> (i32, i32) {
    %c0_i32 = arith.constant 0 : i32
    %c0_i32_0 = arith.constant 0 : i32
    %c0_i32_1 = arith.constant 0 : i32
    return %c0_i32, %c0_i32_0 : i32, i32
  }
  func.func @transform_2(%arg0: i32) -> (i32, i32) {
    %c0_i32 = arith.constant 0 : i32
    %c0_i32_0 = arith.constant 0 : i32
    %c0_i32_1 = arith.constant 0 : i32
    return %c0_i32, %c0_i32_0 : i32, i32
  }
  func.func @transform_3(%arg0: i32) -> (i32, i32) {
    %c0_i32 = arith.constant 0 : i32
    %c0_i32_0 = arith.constant 0 : i32
    %c0_i32_1 = arith.constant 0 : i32
    return %c0_i32, %c0_i32_0 : i32, i32
  }
  func.func @transform_4(%arg0: i32) -> (i32, i32) {
    %c0_i32 = arith.constant 0 : i32
    %c0_i32_0 = arith.constant 0 : i32
    %c0_i32_1 = arith.constant 0 : i32
    return %c0_i32, %c0_i32_0 : i32, i32
  }
  func.func @transform_5(%arg0: i32) -> (i32, i32) {
    %c0_i32 = arith.constant 0 : i32
    %c0_i32_0 = arith.constant 0 : i32
    %c0_i32_1 = arith.constant 0 : i32
    return %c0_i32, %c0_i32_0 : i32, i32
  }
  func.func @transform_6(%arg0: i32) -> (i32, i32) {
    %c0_i32 = arith.constant 0 : i32
    %c0_i32_0 = arith.constant 0 : i32
    %c0_i32_1 = arith.constant 0 : i32
    return %c0_i32, %c0_i32_0 : i32, i32
  }
  func.func @transform_7(%arg0: i32) -> (i32, i32) {
    %c0_i32 = arith.constant 0 : i32
    %c0_i32_0 = arith.constant 0 : i32
    %c0_i32_1 = arith.constant 0 : i32
    return %c0_i32, %c0_i32_0 : i32, i32
  }
  func.func @transform_8(%arg0: i32) -> (i32, i32) {
    %c0_i32 = arith.constant 0 : i32
    %c0_i32_0 = arith.constant 0 : i32
    %c0_i32_1 = arith.constant 0 : i32
    return %c0_i32, %c0_i32_0 : i32, i32
  }
  func.func @transform_9(%arg0: i32) -> (i32, i32) {
    %c0_i32 = arith.constant 0 : i32
    %c0_i32_0 = arith.constant 0 : i32
    return %arg0, %c0_i32 : i32, i32
  }
}

</mosaic_0001>

<bundles_post_ra>
// kernel: tpu_custom_call.1
= control target key start
LH: loop header
LB: loop body
LE: loop exit
PB: predicated region body
PF: predicated region fallthrough
CT: control target
= control target key end

     0   :  { %14 = vsyncpa [#allocation3], 0  ;;  %s1026_s0 = inlined_call_operand.vmem [shape: f32[8,256], index: 0, kind: input, shape index: {}]   ;;  %s1027_s1 = inlined_call_operand.hbm [shape: f32[256,256], index: 1, kind: input, shape index: {}]   ;;  %s1028_s2 = inlined_call_operand.hbm [shape: f32[256,128], index: 2, kind: input, shape index: {}]   ;;  %s1029_s3 = inlined_call_operand.vmem [shape: f32[128,32], index: 3, kind: input, shape index: {}]   ;;  %s1030_s4 = inlined_call_operand.vmem [shape: f32[32,16], index: 4, kind: input, shape index: {}]   ;;  %s1031_s5 = inlined_call_operand.vmem [shape: f32[1,256], index: 5, kind: input, shape index: {}]   ;;  %s1032_s6 = inlined_call_operand.vmem [shape: f32[1,128], index: 6, kind: input, shape index: {}]   ;;  %s1033_s7 = inlined_call_operand.vmem [shape: f32[1,32], index: 7, kind: input, shape index: {}]   ;;  %s1034_s8 = inlined_call_operand.vmem [shape: f32[1,16], index: 8, kind: input, shape index: {}]   ;;  %s1035_s9 = inlined_call_operand.hbm [shape: f32[8,16], index: 9, kind: output, shape index: {}]  }
   0x1   :  { %15 = vsyncpa [#allocation6], 0 }
   0x2   :  { %16 = vsyncpa [#allocation4], 0  ;;  %s842_s30 = smov [#allocation2]   ;;  %s770_s13 = scalar_lea.hbm %s1027_s1, 8192 }
   0x3   :  { %s24_s10 = sshll.u32 %s842_s30, 4  ;;  %p771_p0 = scmp.ne.s32.totalorder %s1027_s1, %s770_s13  ;;  %s25_s10 = int_to_ptr.vmem [resolvable:$true] %s24_s10 }
   0x4   :  { %p774_p1 = scmp.lt.u32.totalorder %s770_s13, %s1027_s1 }
   0x6   :  { %p776_p2 = pnand %p774_p1, %p771_p0 }
   0x8   :  { %779 = shalt.err (!%p776_p2)
}
   0x9   :  { %s780_s18 = scalar_lea.vmem %s25_s10, 8192  ;;  %p785_p4 = scmp.lt.s32.totalorder %s25_s10, %s25_s10 }
   0xa   :  { %p781_p3 = scmp.ne.s32.totalorder %s25_s10, %s780_s18  ;;  %p786_p5 = scmp.lt.s32.totalorder %s780_s18, %s780_s18 }
   0xc   :  { %p787_p6 = por %p786_p5, %p785_p4 }
   0xe   :  { %p788_p7 = pnand %p787_p6, %p781_p3 }
  0x10   :  { %791 = shalt.err (!%p788_p7)
}
  0x11   :  { %s843_s19 = smov 256   ;;  %s844_s20 = smov 16  }
  0x12   :  { %30 = dma.hbm_to_vmem [thread:$0]  %s1027_s1, 8192, %s25_s10, [#allocation3], %s843_s19, %s843_s19, %s844_s20  }
  0x13   :  { %s845_s23 = smov [#allocation5]   ;;  %s792_s27 = scalar_lea.hbm %s1028_s2, 4096 }
  0x14   :  { %s36_s24 = sshll.u32 %s845_s23, 4  ;;  %p793_p8 = scmp.ne.s32.totalorder %s1028_s2, %s792_s27  ;;  %s37_s24 = int_to_ptr.vmem [resolvable:$true] %s36_s24 }
  0x15   :  { %p796_p9 = scmp.lt.u32.totalorder %s792_s27, %s1028_s2 }
  0x17   :  { %p798_p10 = pnand %p796_p9, %p793_p8 }
  0x19   :  { %801 = shalt.err (!%p798_p10)
}
  0x1a   :  { %s802_s12 = scalar_lea.vmem %s37_s24, 4096  ;;  %p807_p12 = scmp.lt.s32.totalorder %s37_s24, %s37_s24 }
  0x1b   :  { %p803_p11 = scmp.ne.s32.totalorder %s37_s24, %s802_s12  ;;  %p808_p13 = scmp.lt.s32.totalorder %s802_s12, %s802_s12 }
  0x1d   :  { %p809_p0 = por %p808_p13, %p807_p12 }
  0x1f   :  { %p810_p1 = pnand %p809_p0, %p803_p11 }
  0x21   :  { %813 = shalt.err (!%p810_p1)
}
  0x22   :  { %s846_s1 = smov 128   ;;  %s847_s10 = smov 8  }
  0x23   :  { %42 = dma.hbm_to_vmem [thread:$0]  %s1028_s2, 4096, %s37_s24, [#allocation6], %s846_s1, %s846_s1, %s847_s10  }
  0x24   :  { %836 = dma.done.wait [#allocation3], 8192  }
  0x25   :  { %837 = vsyncadd [#allocation3], 4294959104 }
  0x26   :  { %838 = dma.done.wait [#allocation6], 4096  }
  0x27   :  { %839 = vsyncadd [#allocation6], 4294963200  ;;  %v64_v0 = vld [vmem:[#allocation2 + $0x8] sm:$0xff]  ;;  %v66_v1 = vld [vmem:[#allocation2 + $0x18] sm:$0xff]  ;;  %vm849_vm2 = vmmov 0   ;;  %vm435_vm5 = vcmask 261120  }
  0x28   :  { %v63_v2 = vld [vmem:[#allocation2] sm:$0xff]  ;;  %v634_v3 = vpack.c.bf16 %v66_v1, %v64_v0  ;;  %v65_v4 = vld [vmem:[#allocation2 + $0x10] sm:$0xff]  ;;  %v68_v5 = vld [vmem:[#allocation2 + $0x28] sm:$0xff]  ;;  %s851_s2 = smov [#allocation7]   ;;  %vm509_vm6 = vcmask 130048  }
  0x29   :  { %v70_v6 = vld [vmem:[#allocation2 + $0x38] sm:$0xff]  ;;  %v636_v7 = vpack.c.bf16 %v65_v4, %v63_v2  ;;  %v67_v9 = vld [vmem:[#allocation2 + $0x20] sm:$0xff]  ;;  %v69_v10 = vld [vmem:[#allocation2 + $0x30] sm:$0xff] }
  0x2a   :  { %v638_v8 = vpack.c.bf16 %v70_v6, %v68_v5  ;;  %v72_v11 = vld [vmem:[#allocation2 + $0x48] sm:$0xff]  ;;  %635 = vmatprep.subr.bf16.mxu0 %v634_v3  ;;  %v74_v12 = vld [vmem:[#allocation2 + $0x58] sm:$0xff]  ;;  %v640_v13 = vpack.c.bf16 %v69_v10, %v67_v9  ;;  %v71_v15 = vld [vmem:[#allocation2 + $0x40] sm:$0xff] }
  0x2b   :  { %637 = vmatpush1.bf16.msra.mxu0 %v636_v7  ;;  %v642_v14 = vpack.c.bf16 %v74_v12, %v72_v11  ;;  %v73_v16 = vld [vmem:[#allocation2 + $0x50] sm:$0xff]  ;;  %v76_v17 = vld [vmem:[#allocation2 + $0x68] sm:$0xff]  ;;  %v78_v18 = vld [vmem:[#allocation2 + $0x78] sm:$0xff] }
  0x2c   :  { %639 = vmatprep.subr.bf16.mxu0 %v638_v8  ;;  %v644_v19 = vpack.c.bf16 %v73_v16, %v71_v15  ;;  %v646_v20 = vpack.c.bf16 %v78_v18, %v76_v17  ;;  %v75_v21 = vld [vmem:[#allocation2 + $0x60] sm:$0xff]  ;;  %v77_v22 = vld [vmem:[#allocation2 + $0x70] sm:$0xff]  ;;  %v80_v23 = vld [vmem:[#allocation2 + $0x88] sm:$0xff] }
  0x2d   :  { %v82_v24 = vld [vmem:[#allocation2 + $0x98] sm:$0xff]  ;;  %v648_v25 = vpack.c.bf16 %v77_v22, %v75_v21  ;;  %v79_v27 = vld [vmem:[#allocation2 + $0x80] sm:$0xff]  ;;  %v81_v28 = vld [vmem:[#allocation2 + $0x90] sm:$0xff] }
  0x2e   :  { %v650_v26 = vpack.c.bf16 %v82_v24, %v80_v23  ;;  %v84_v29 = vld [vmem:[#allocation2 + $0xa8] sm:$0xff]  ;;  %v86_v30 = vld [vmem:[#allocation2 + $0xb8] sm:$0xff]  ;;  %v652_v31 = vpack.c.bf16 %v81_v28, %v79_v27  ;;  %v83_v33 = vld [vmem:[#allocation2 + $0xa0] sm:$0xff] }
  0x2f   :  { %641 = vmatpush1.bf16.msra.mxu0 %v640_v13  ;;  %v654_v32 = vpack.c.bf16 %v86_v30, %v84_v29  ;;  %v85_v34 = vld [vmem:[#allocation2 + $0xb0] sm:$0xff]  ;;  %v88_v35 = vld [vmem:[#allocation2 + $0xc8] sm:$0xff]  ;;  %v90_v36 = vld [vmem:[#allocation2 + $0xd8] sm:$0xff] }
  0x30   :  { %643 = vmatprep.subr.bf16.mxu0 %v642_v14  ;;  %v656_v37 = vpack.c.bf16 %v85_v34, %v83_v33  ;;  %v87_v38 = vld [vmem:[#allocation2 + $0xc0] sm:$0xff]  ;;  %v89_v39 = vld [vmem:[#allocation2 + $0xd0] sm:$0xff]  ;;  %v658_v40 = vpack.c.bf16 %v90_v36, %v88_v35  ;;  %v92_v41 = vld [vmem:[#allocation2 + $0xe8] sm:$0xff] }
  0x31   :  { %v94_v42 = vld [vmem:[#allocation2 + $0xf8] sm:$0xff]  ;;  %v62_v43 = vld [vmem:[%s1026_s0 + $0x8] sm:$0xff]  ;;  %v232_v44 = vld [vmem:[#allocation5 + $0x80] sm:$0xff]  ;;  %v660_v51 = vpack.c.bf16 %v89_v39, %v87_v38 }
  0x32   :  { %203 = vmatprep.mubr.f32.mxu0 %v62_v43  ;;  %v233_v45 = vld [vmem:[#allocation5 + $0x88] sm:$0xff]  ;;  %v216_v46 = vld [vmem:[#allocation5] sm:$0xff]  ;;  %v234_v49 = vld [vmem:[#allocation5 + $0x90] sm:$0xff]  ;;  %v662_v57 = vpack.c.bf16 %v94_v42, %v92_v41 }
  0x33   :  { %645 = vmatpush1.bf16.msra.mxu0 %v644_v19  ;;  %v698_v47 = vpack.c.bf16 %v233_v45, %v232_v44  ;;  %v217_v48 = vld [vmem:[#allocation5 + $0x8] sm:$0xff]  ;;  %v235_v50 = vld [vmem:[#allocation5 + $0x98] sm:$0xff]  ;;  %v218_v54 = vld [vmem:[#allocation5 + $0x10] sm:$0xff] }
  0x34   :  { %647 = vmatprep.subr.bf16.mxu0 %v646_v20  ;;  %v700_v52 = vpack.c.bf16 %v217_v48, %v216_v46  ;;  %v702_v53 = vpack.c.bf16 %v235_v50, %v234_v49  ;;  %v219_v55 = vld [vmem:[#allocation5 + $0x18] sm:$0xff]  ;;  %v236_v56 = vld [vmem:[#allocation5 + $0xa0] sm:$0xff]  ;;  %v93_v59 = vld [vmem:[#allocation2 + $0xf0] sm:$0xff] }
  0x35   :  { %v91_v58 = vld [vmem:[#allocation2 + $0xe0] sm:$0xff]  ;;  %699 = vmatprep.subr.bf16.mxu1 %v698_v47  ;;  %v237_v60 = vld [vmem:[#allocation5 + $0xa8] sm:$0xff]  ;;  %v98_v62 = vld [vmem:[#allocation2 + $0x118] sm:$0xff]  ;;  %v704_v63 = vpack.c.bf16 %v219_v55, %v218_v54 }
  0x36   :  { %v96_v61 = vld [vmem:[#allocation2 + $0x108] sm:$0xff]  ;;  %701 = vmatpush3.bf16.msra.mxu1 %v700_v52  ;;  %v706_v0 = vpack.c.bf16 %v237_v60, %v236_v56  ;;  %v220_v1 = vld [vmem:[#allocation5 + $0x20] sm:$0xff]  ;;  %v664_v3 = vpack.c.bf16 %v93_v59, %v91_v58  ;;  %v238_v4 = vld [vmem:[#allocation5 + $0xb0] sm:$0xff] }
  0x37   :  { %649 = vmatpush1.bf16.msra.mxu0 %v648_v25  ;;  %703 = vmatprep.subr.bf16.mxu1 %v702_v53  ;;  %v221_v2 = vld [vmem:[#allocation5 + $0x28] sm:$0xff]  ;;  %v239_v5 = vld [vmem:[#allocation5 + $0xb8] sm:$0xff]  ;;  %v666_v6 = vpack.c.bf16 %v98_v62, %v96_v61  ;;  %v95_v7 = vld [vmem:[#allocation2 + $0x100] sm:$0xff] }
  0x38   :  { %651 = vmatprep.subr.bf16.mxu0 %v650_v26  ;;  %v97_v8 = vld [vmem:[#allocation2 + $0x110] sm:$0xff]  ;;  %v100_v9 = vld [vmem:[#allocation2 + $0x128] sm:$0xff]  ;;  %v102_v10 = vld [vmem:[#allocation2 + $0x138] sm:$0xff]  ;;  %v708_v11 = vpack.c.bf16 %v221_v2, %v220_v1  ;;  %v710_v12 = vpack.c.bf16 %v239_v5, %v238_v4 }
  0x39   :  { %v222_v13 = vld [vmem:[#allocation5 + $0x30] sm:$0xff]  ;;  %v223_v14 = vld [vmem:[#allocation5 + $0x38] sm:$0xff]  ;;  %v668_v15 = vpack.c.bf16 %v97_v8, %v95_v7  ;;  %v240_v16 = vld [vmem:[#allocation5 + $0xc0] sm:$0xff]  ;;  %v670_v18 = vpack.c.bf16 %v102_v10, %v100_v9 }
  0x3a   :  { %705 = vmatpush3.bf16.msra.mxu1 %v704_v63  ;;  %v241_v17 = vld [vmem:[#allocation5 + $0xc8] sm:$0xff]  ;;  %v99_v19 = vld [vmem:[#allocation2 + $0x120] sm:$0xff]  ;;  %v101_v20 = vld [vmem:[#allocation2 + $0x130] sm:$0xff]  ;;  %v712_v23 = vpack.c.bf16 %v223_v14, %v222_v13 }
  0x3b   :  { %653 = vmatpush1.bf16.msra.mxu0 %v652_v31  ;;  %707 = vmatprep.subr.bf16.mxu1 %v706_v0  ;;  %v104_v21 = vld [vmem:[#allocation2 + $0x148] sm:$0xff]  ;;  %v106_v22 = vld [vmem:[#allocation2 + $0x158] sm:$0xff]  ;;  %v714_v24 = vpack.c.bf16 %v241_v17, %v240_v16  ;;  %v224_v25 = vld [vmem:[#allocation5 + $0x40] sm:$0xff]  ;;  %v672_v27 = vpack.c.bf16 %v101_v20, %v99_v19  ;;  %v129_v19 = vlaneseq }
  0x3c   :  { %655 = vmatprep.subr.bf16.mxu0 %v654_v32  ;;  %v225_v26 = vld [vmem:[#allocation5 + $0x48] sm:$0xff]  ;;  %v242_v28 = vld [vmem:[#allocation5 + $0xd0] sm:$0xff]  ;;  %v243_v29 = vld [vmem:[#allocation5 + $0xd8] sm:$0xff]  ;;  %v674_v30 = vpack.c.bf16 %v106_v22, %v104_v21 }
  0x3d   :  { %v103_v31 = vld [vmem:[#allocation2 + $0x140] sm:$0xff]  ;;  %v105_v32 = vld [vmem:[#allocation2 + $0x150] sm:$0xff]  ;;  %v108_v33 = vld [vmem:[#allocation2 + $0x168] sm:$0xff]  ;;  %v716_v35 = vpack.c.bf16 %v225_v26, %v224_v25  ;;  %v718_v36 = vpack.c.bf16 %v243_v29, %v242_v28  ;;  %v130_v20 = vshrl.u32 %v129_v19, 7 }
  0x3e   :  { %709 = vmatpush3.bf16.msra.mxu1 %v708_v11  ;;  %v110_v34 = vld [vmem:[#allocation2 + $0x178] sm:$0xff]  ;;  %v676_v39 = vpack.c.bf16 %v105_v32, %v103_v31  ;;  %v107_v41 = vld [vmem:[#allocation2 + $0x160] sm:$0xff]  ;;  %v109_v42 = vld [vmem:[#allocation2 + $0x170] sm:$0xff] }
  0x3f   :  { %657 = vmatpush1.bf16.msra.mxu0 %v656_v37  ;;  %711 = vmatprep.subr.bf16.mxu1 %v710_v12  ;;  %v226_v37 = vld [vmem:[#allocation5 + $0x50] sm:$0xff]  ;;  %v227_v38 = vld [vmem:[#allocation5 + $0x58] sm:$0xff]  ;;  %v112_v43 = vld [vmem:[#allocation2 + $0x188] sm:$0xff]  ;;  %v680_v46 = vpack.c.bf16 %v109_v42, %v107_v41  ;;  %v131_v21 = vsub.s32 0, %v130_v20 }
  0x40   :  { %659 = vmatprep.subr.bf16.mxu0 %v658_v40  ;;  %v678_v40 = vpack.c.bf16 %v110_v34, %v108_v33  ;;  %v114_v44 = vld [vmem:[#allocation2 + $0x198] sm:$0xff]  ;;  %v720_v45 = vpack.c.bf16 %v227_v38, %v226_v37  ;;  %v111_v48 = vld [vmem:[#allocation2 + $0x180] sm:$0xff]  ;;  %v113_v49 = vld [vmem:[#allocation2 + $0x190] sm:$0xff] }
  0x41   :  { %v682_v47 = vpack.c.bf16 %v114_v44, %v112_v43  ;;  %v116_v50 = vld [vmem:[#allocation2 + $0x1a8] sm:$0xff]  ;;  %v684_v52 = vpack.c.bf16 %v113_v49, %v111_v48  ;;  %v115_v54 = vld [vmem:[#allocation2 + $0x1a0] sm:$0xff]  ;;  %v117_v55 = vld [vmem:[#allocation2 + $0x1b0] sm:$0xff] }
  0x42   :  { %713 = vmatpush3.bf16.msra.mxu1 %v712_v23  ;;  %v120_v56 = vld [vmem:[#allocation2 + $0x1c8] sm:$0xff]  ;;  %v688_v58 = vpack.c.bf16 %v117_v55, %v115_v54  ;;  %v119_v60 = vld [vmem:[#allocation2 + $0x1c0] sm:$0xff]  ;;  %v121_v61 = vld [vmem:[#allocation2 + $0x1d0] sm:$0xff]  ;;  %v135_v23 = vsub.s32 1, %v130_v20 }
  0x43   :  { %661 = vmatpush1.bf16.msra.mxu0 %v660_v51  ;;  %715 = vmatprep.subr.bf16.mxu1 %v714_v24  ;;  %v118_v51 = vld [vmem:[#allocation2 + $0x1b8] sm:$0xff]  ;;  %v124_v62 = vld [vmem:[#allocation2 + $0x1e8] sm:$0xff]  ;;  %v692_v0 = vpack.c.bf16 %v121_v61, %v119_v60  ;;  %v123_v2 = vld [vmem:[#allocation2 + $0x1e0] sm:$0xff] }
  0x44   :  { %663 = vmatprep.subr.bf16.mxu0 %v662_v57  ;;  %v686_v53 = vpack.c.bf16 %v118_v51, %v116_v50  ;;  %v122_v57 = vld [vmem:[#allocation2 + $0x1d8] sm:$0xff]  ;;  %v61_v5 = vld [vmem:[%s1026_s0] sm:$0xff]  ;;  %v245_v7 = vld [vmem:[#allocation5 + $0xe8] sm:$0xff] }
  0x45   :  { %v690_v59 = vpack.c.bf16 %v122_v57, %v120_v56  ;;  %v126_v63 = vld [vmem:[#allocation2 + $0x1f8] sm:$0xff]  ;;  %v228_v9 = vld [vmem:[#allocation5 + $0x60] sm:$0xff]  ;;  %v229_v10 = vld [vmem:[#allocation5 + $0x68] sm:$0xff] }
  0x46   :  { %717 = vmatpush3.bf16.msra.mxu1 %v716_v35  ;;  %v694_v1 = vpack.c.bf16 %v126_v63, %v124_v62  ;;  %v724_v11 = vpack.c.bf16 %v229_v10, %v228_v9  ;;  %v246_v12 = vld [vmem:[#allocation5 + $0xf0] sm:$0xff]  ;;  %v247_v13 = vld [vmem:[#allocation5 + $0xf8] sm:$0xff]  ;;  %v127_v22 = vld [vmem:[%s1031_s5] sm:$0x3] }
  0x47   :  { %665 = vmatpush1.bf16.msra.mxu0 %v664_v3  ;;  %719 = vmatprep.subr.bf16.mxu1 %v718_v36  ;;  %v125_v3 = vld [vmem:[#allocation2 + $0x1f0] sm:$0xff]  ;;  %v726_v14 = vpack.c.bf16 %v247_v13, %v246_v12  ;;  %v231_v16 = vld [vmem:[#allocation5 + $0x78] sm:$0xff]  ;;  %v132_v24 = vrot.slane %v127_v22, %v131_v21  ;;  %v136_v25 = vrot.slane %v127_v22, %v135_v23  ;;  %v329_v31 = vld [vmem:[%s1029_s3 + $0x8] sm:$0xff] }
  0x48   :  { %667 = vmatprep.subr.bf16.mxu0 %v666_v6  ;;  %v696_v4 = vpack.c.bf16 %v125_v3, %v123_v2  ;;  %v244_v6 = vld [vmem:[#allocation5 + $0xe0] sm:$0xff]  ;;  %v330_v36 = vld [vmem:[%s1029_s3 + $0x10] sm:$0xff]  ;;  %v331_v37 = vld [vmem:[%s1029_s3 + $0x18] sm:$0xff] }
  0x49   :  { %v722_v8 = vpack.c.bf16 %v245_v7, %v244_v6  ;;  %v333_v41 = vld [vmem:[%s1029_s3 + $0x28] sm:$0xff]  ;;  %v334_v43 = vld [vmem:[%s1029_s3 + $0x30] sm:$0xff]  ;;  %v335_v44 = vld [vmem:[%s1029_s3 + $0x38] sm:$0xff] }
  0x4a   :  { %721 = vmatpush3.bf16.msra.mxu1 %v720_v45  ;;  %v740_v45 = vpack.c.bf16 %v335_v44, %v334_v43  ;;  %v338_v49 = vld [vmem:[%s1029_s3 + $0x50] sm:$0xff]  ;;  %v339_v50 = vld [vmem:[%s1029_s3 + $0x58] sm:$0xff]  ;;  %v425_v60 = vld [vmem:[%s1030_s4 + $0x8] sm:$0xff] }
  0x4b   :  { %669 = vmatpush1.bf16.msra.mxu0 %v668_v15  ;;  %723 = vmatprep.subr.bf16.mxu1 %v722_v8  ;;  %v230_v15 = vld [vmem:[#allocation5 + $0x70] sm:$0xff]  ;;  %v746_v51 = vpack.c.bf16 %v339_v50, %v338_v49  ;;  %v343_v56 = vld [vmem:[%s1029_s3 + $0x78] sm:$0xff]  ;;  %v527_v63 = vld [vmem:[%s1032_s6] ss:$0 sm:$0xff] }
  0x4c   :  { %671 = vmatprep.subr.bf16.mxu0 %v670_v18  ;;  %v728_v17 = vpack.c.bf16 %v231_v16, %v230_v15  ;;  %v848_v18 = vmov 0.0|0.0   ;;  %v342_v55 = vld [vmem:[%s1029_s3 + $0x70] sm:$0xff]  ;;  %v427_v6 = vld [vmem:[%s1030_s4 + $0x18] sm:$0xff]  ;;  %v528_v8 = vld [vmem:[%s1033_s7] ss:$0 sm:$0xff] }
  0x4d   :  { %v752_v57 = vpack.c.bf16 %v343_v56, %v342_v55 }
  0x4e   :  { %725 = vmatpush3.bf16.msra.mxu1 %v724_v11 }
  0x4f   :  { %673 = vmatpush1.bf16.msra.mxu0 %v672_v27  ;;  %727 = vmatprep.subr.bf16.mxu1 %v726_v14  ;;  %v529_v14 = vld [vmem:[%s1034_s8] ss:$0 sm:$0xff] }
  0x50   :  { %675 = vmatprep.subr.bf16.mxu0 %v674_v30  ;;  %v328_v30 = vld [vmem:[%s1029_s3] sm:$0xff] }
  0x51   :  { %v731_v34 = vpack.c.bf16 %v329_v31, %v328_v30 }
  0x52   :  { %729 = vmatpush3.bf16.msra.mxu1 %v728_v17 }
  0x53   :  { %677 = vmatpush1.bf16.msra.mxu0 %v676_v39  ;;  %730 = vmatprep.subr.bf16.mxu1 %v848_v18  ;;  %v734_v39 = vpack.c.bf16 %v331_v37, %v330_v36 }
  0x54   :  { %679 = vmatprep.subr.bf16.mxu0 %v678_v40  ;;  %v332_v40 = vld [vmem:[%s1029_s3 + $0x20] sm:$0xff] }
  0x55   :  { %v737_v42 = vpack.c.bf16 %v333_v41, %v332_v40 }
  0x57   :  { %681 = vmatpush1.bf16.msra.mxu0 %v680_v46  ;;  %v336_v46 = vld [vmem:[%s1029_s3 + $0x40] sm:$0xff] }
  0x58   :  { %683 = vmatprep.subr.bf16.mxu0 %v682_v47  ;;  %v337_v47 = vld [vmem:[%s1029_s3 + $0x48] sm:$0xff] }
  0x59   :  { %v743_v48 = vpack.c.bf16 %v337_v47, %v336_v46 }
  0x5b   :  { %685 = vmatpush1.bf16.msra.mxu0 %v684_v52  ;;  %v340_v52 = vld [vmem:[%s1029_s3 + $0x60] sm:$0xff] }
  0x5c   :  { %687 = vmatprep.subr.bf16.mxu0 %v686_v53  ;;  %v341_v53 = vld [vmem:[%s1029_s3 + $0x68] sm:$0xff] }
  0x5d   :  { %v749_v54 = vpack.c.bf16 %v341_v53, %v340_v52 }
  0x5f   :  { %689 = vmatpush1.bf16.msra.mxu0 %v688_v58  ;;  %v850_v58 = vmov 0.0  }
  0x60   :  { %691 = vmatprep.subr.bf16.mxu0 %v690_v59  ;;  %v424_v59 = vld [vmem:[%s1030_s4] sm:$0xff] }
  0x61   :  { %v755_v61 = vpack.c.bf16 %v425_v60, %v424_v59 }
  0x63   :  { %693 = vmatpush1.bf16.msra.mxu0 %v692_v0 }
  0x64   :  { %695 = vmatprep.subr.bf16.mxu0 %v694_v1 }
  0x67   :  { %697 = vmatpush1.bf16.msra.mxu0 %v696_v4 }
  0x68   :  { %754 = vmatprep.subr.bf16.mxu0 %v848_v18 }
  0x6a   :  { %204 = vmatmul.mubr.f32.vlgmr.msra.gmra.mrb[0].mxu0 %v61_v5  ;;  %v426_v5 = vld [vmem:[%s1030_s4 + $0x10] sm:$0xff]  ;;  %s517_s4 = sshll.u32 %s851_s2, 4  ;;  %s518_s4 = int_to_ptr.vmem [resolvable:$true] %s517_s4 }
  0x6b   :  { %631 = vmatprep.mubr.msk.f32.mxu0 %vm849_vm2, %v850_v58  ;;  %756 = vmatpush3.bf16.msra.mxu0 %v755_v61  ;;  %v758_v7 = vpack.c.bf16 %v427_v6, %v426_v5  ;;  %s814_s7 = scalar_lea.vmem %s518_s4, 128  ;;  %p819_p3 = scmp.lt.s32.totalorder %s518_s4, %s518_s4 }
  0x6c   :  { %757 = vmatprep.subr.bf16.mxu0 %v848_v18  ;;  %p815_p2 = scmp.ne.s32.totalorder %s518_s4, %s814_s7  ;;  %p820_p4 = scmp.lt.s32.totalorder %s814_s7, %s814_s7 }
  0x6e   :  { %p821_p5 = por %p820_p4, %p819_p3 }
  0x6f   :  { %759 = vmatpush3.bf16.msra.mxu0 %v758_v7 }
  0x70   :  { %p822_p6 = pnand %p821_p5, %p815_p2 }
 0x13d   :  { %v205_v26 = vpop.f32.mrb[0].mxu0 }
 0x13e   :  { %v206_v27 = vadd.f32 %v205_v26, %v132_v24  ;;  %v207_v28 = vpop.f32.mrb[1].mxu0 }
 0x13f   :  { %v208_v29 = vadd.f32 %v207_v28, %v136_v25 }
 0x140   :  { %v212_v32 = vmul.f32 0.2, %v206_v27  ;;  %vm210_vm1 = vcmp.gt.f32.partialorder %v206_v27, 0.0 }
 0x141   :  { %vm211_vm0 = vcmp.gt.f32.partialorder %v208_v29, 0.0  ;;  %v213_v33 = vmul.f32 0.2, %v208_v29 }
 0x142   :  { %v214_v38 = vsel %vm210_vm1, %v206_v27, %v212_v32 }
 0x143   :  { %v215_v35 = vsel %vm211_vm0, %v208_v29, %v213_v33 }
 0x144   :  { %319 = vmatprep.mubr.f32.mxu1 %v215_v35 }
 0x145   :  { %320 = vmatmul.mubr.f32.vlgmr.msra.gmra.mrb[0].mxu1 %v214_v38 }
 0x146   :  { %732 = vmatpush3.bf16.msra.mxu1 %v731_v34  ;;  %620 = vmatprep.mubr.msk.f32.mxu1 %vm849_vm2, %v850_v58 }
 0x147   :  { %733 = vmatprep.subr.bf16.mxu1 %v848_v18 }
 0x14a   :  { %735 = vmatpush3.bf16.msra.mxu1 %v734_v39 }
 0x14b   :  { %736 = vmatprep.subr.bf16.mxu1 %v848_v18 }
 0x14e   :  { %738 = vmatpush3.bf16.msra.mxu1 %v737_v42 }
 0x14f   :  { %739 = vmatprep.subr.bf16.mxu1 %v848_v18 }
 0x152   :  { %741 = vmatpush3.bf16.msra.mxu1 %v740_v45 }
 0x153   :  { %742 = vmatprep.subr.bf16.mxu1 %v848_v18 }
 0x156   :  { %744 = vmatpush3.bf16.msra.mxu1 %v743_v48 }
 0x157   :  { %745 = vmatprep.subr.bf16.mxu1 %v848_v18 }
 0x15a   :  { %747 = vmatpush3.bf16.msra.mxu1 %v746_v51 }
 0x15b   :  { %748 = vmatprep.subr.bf16.mxu1 %v848_v18 }
 0x15e   :  { %750 = vmatpush3.bf16.msra.mxu1 %v749_v54 }
 0x15f   :  { %751 = vmatprep.subr.bf16.mxu1 %v848_v18 }
 0x162   :  { %753 = vmatpush3.bf16.msra.mxu1 %v752_v57 }
 0x218   :  { %v563_v62 = vpop.f32.mrb[0].mxu1 }
 0x219   :  { %v564_v0 = vpop.f32.mrb[1].mxu1 }
 0x21a   :  { %v565_v1 = vadd.f32 %v564_v0, %v563_v62 }
 0x21c   :  { %v322_v2 = vadd.f32 %v565_v1, %v527_v63 }
 0x21e   :  { %v326_v3 = vmul.f32 0.2, %v322_v2  ;;  %vm325_vm3 = vcmp.gt.f32.partialorder %v322_v2, 0.0 }
 0x220   :  { %v327_v4 = vsel %vm325_vm3, %v322_v2, %v326_v3 }
 0x221   :  { %621 = vmatmul.mubr.f32.vlgmr.msra.gmra.mrb[2].mxu1 %v327_v4 }
 0x2f4   :  { %v417_v9 = vpop.f32.mrb[2].mxu1 }
 0x2f5   :  { %v418_v10 = vadd.f32 %v528_v8, %v417_v9  ;;  %v622_v11 = vpop.f32.mrb[3].mxu1 }
 0x2f7   :  { %vm421_vm4 = vcmp.gt.f32.partialorder %v418_v10, 0.0  ;;  %v422_v12 = vmul.f32 0.2, %v418_v10 }
 0x2f9   :  { %v423_v13 = vsel %vm421_vm4, %v418_v10, %v422_v12 }
 0x2fa   :  { %632 = vmatmul.mubr.msk.f32.vlgmr.msra.gmra.mrb[2].mxu0 %vm435_vm5, %v423_v13 }
 0x3cd   :  { %v505_v15 = vpop.f32.mrb[2].mxu0 }
 0x3ce   :  { %v506_v16 = vadd.f32 %v529_v14, %v505_v15  ;;  %v633_v17 = vpop.f32.mrb[3].mxu0 }
 0x3d0   :  { %510 = vst.msk [vmem:[#allocation7] sm:$0xff] %vm509_vm6, %v506_v16 }
 0x3d1   :  { %825 = shalt.err (!%p822_p6)
}
 0x3d2   :  { %s826_s17 = scalar_lea.hbm %s1035_s9, 128 }
 0x3d3   :  { %p827_p7 = scmp.ne.s32.totalorder %s1035_s9, %s826_s17  ;;  %p830_p8 = scmp.lt.u32.totalorder %s826_s17, %s1035_s9 }
 0x3d5   :  { %p832_p9 = pnand %p830_p8, %p827_p7 }
 0x3d7   :  { %835 = shalt.err (!%p832_p9)
}
 0x3d8   :  { %520 = dma.vmem_to_hbm [thread:$0]  %s518_s4, 128, %s1035_s9, [#allocation4]  }
 0x3d9   :  { %840 = dma.done.wait [#allocation4], 128  }
 0x3da   :  { %841 = vsyncadd [#allocation4], 4294967168 }
 0x3db   :  { %524 = vsyncpa [#allocation3], 1 }
 0x3dc   :  { %525 = vsyncpa [#allocation6], 1 }
 0x3dd   :  { %526 = vsyncpa [#allocation4], 1 }

</bundles_post_ra>
